<compile_context>
chip_gen: v5e
topology: v5e:2x2
jax: 0.10.0
libtpu: 0.0.40
codegen_flags: <defaults>
</compile_context>

<pallas_src>
import jax
import jax.numpy as jnp
from jax.experimental import pallas as pl
from jax.experimental.pallas import tpu as pltpu  # noqa: F401  (TPU backend import)


def _forward_kernel(b_ref, o_ref):
    # torch:  c = a & b ; logical_or(c, b)  ==  b   (absorption law)
    # -> identity copy of b; output buffer is aliased to b's buffer.
    o_ref[...] = b_ref[...]


def simple_and_module(a, b):
    """Elementwise logical_or(a & b, b), matching SimpleAndModule.forward.

    Returns a bool array of the same shape as the inputs.
    """
    assert a.shape == b.shape, "broadcasting not needed for this test module"
    orig_shape = b.shape
    n = b.size

    # General path: torch.logical_or returns bool; for non-bool inputs the
    # result is (b != 0).  For the bool test inputs this branch is skipped, so
    # no extra XLA elementwise ops surround the custom call.
    if b.dtype != jnp.bool_:
        b = b != 0

    # Lay the bool data out lane-dense (last dim = 128).  For (2,4,16,16)
    # n = 2048 = 16 * 128, so pad == 0 and both reshapes are metadata-only.
    lanes = 128
    rows = -(-n // lanes)  # ceil
    pad = rows * lanes - n

    b2 = b.reshape(-1)
    if pad:  # statically 0 for this shape; kept only for generality
        b2 = jnp.pad(b2, (0, pad))
    b2 = b2.reshape(rows, lanes)

    out2 = pl.pallas_call(
        _forward_kernel,
        out_shape=jax.ShapeDtypeStruct((rows, lanes), jnp.bool_),
        in_specs=[pl.BlockSpec((rows, lanes), lambda: (0, 0))],
        out_specs=pl.BlockSpec((rows, lanes), lambda: (0, 0)),
        # Reuse b's HBM buffer as the output buffer: no extra output
        # allocation, minimal writeback (matters most on v5e's single vst slot).
        input_output_aliases={0: 0},
        # Advisory hint: tiny, pure-memory op (no flops/transcendentals).
        cost_estimate=pl.CostEstimate(
            flops=0, transcendentals=0, bytes_accessed=2 * rows * lanes
        ),
    )(b2)

    return out2.reshape(-1)[:n].reshape(orig_shape)


if __name__ == "__main__":
    key = jax.random.PRNGKey(0)
    k1, k2 = jax.random.split(key)
    shape = (2, 4, 16, 16)  # small NCHW-like bool tensors, as in and_test.py
    a = jax.random.bernoulli(k1, p=0.5, shape=shape)
    b = jax.random.bernoulli(k2, p=0.5, shape=shape)

    out = simple_and_module(a, b)
    out = jax.block_until_ready(out)

    # Reference check in plain JAX (mirrors torch semantics).
    ref = jnp.logical_or(jnp.logical_and(a, b), b)
    assert out.dtype == jnp.bool_
    assert out.shape == shape
    assert bool(jnp.all(out == ref))

    print("KERNEL_OK")
</pallas_src>

<mosaic_0001>
module attributes {stable_mosaic.version = 11 : i64} {
  func.func @_forward_kernel(%arg0: memref<16x128xi32, #tpu.memory_space<vmem>>, %arg1: memref<16x128xi32, #tpu.memory_space<vmem>>) attributes {dimension_semantics = [], scalar_prefetch = 0 : i64, scratch_operands = 0 : i64, tpu.core_type = #tpu.core_type<tc>} {
    %c0 = arith.constant 0 : index
    %c0_0 = arith.constant 0 : index
    %0 = vector.load %arg0[%c0, %c0_0] : memref<16x128xi32, #tpu.memory_space<vmem>>, vector<16x128xi32>
    %cst = arith.constant dense<0> : vector<16x128xi32>
    %1 = arith.cmpi ne, %0, %cst : vector<16x128xi32>
    %c0_1 = arith.constant 0 : index
    %c0_2 = arith.constant 0 : index
    %2 = vector.load %arg1[%c0_1, %c0_2] : memref<16x128xi32, #tpu.memory_space<vmem>>, vector<16x128xi32>
    %3 = arith.extui %1 : vector<16x128xi1> to vector<16x128xi32>
    %cst_3 = arith.constant dense<0> : vector<16x128xi32>
    %4 = arith.cmpi ne, %2, %cst_3 : vector<16x128xi32>
    tpu.vector_store %arg1[%c0_1, %c0_2], %3 {strides = array<i32>} : memref<16x128xi32, #tpu.memory_space<vmem>>, vector<16x128xi32>,
    return
  }
}

</mosaic_0001>

<bundles_post_ra>
// kernel: tpu_custom_call.1
= control target key start
LH: loop header
LB: loop body
LE: loop exit
PB: predicated region body
PF: predicated region fallthrough
CT: control target
= control target key end

     0   :  { %v21_v2 = vmov 0   ;;  %s44_s0 = inlined_call_operand.vmem [shape: s32[16,128], index: 0, kind: input, shape index: {}, may-alias: {0,1}]   ;;  %s45_s1 = inlined_call_operand.vmem [shape: s32[16,128], index: 1, kind: output, shape index: {}, may-alias: {0,1}]  }
   0x1   :  { %v8_v0 = vld [vmem:[%s44_s0] sm:$0xff]  ;;  %v9_v1 = vld [vmem:[%s44_s0 + $0x8] sm:$0xff] }
   0x2   :  { %vm10_vm0 = vcmp.ne.s32.totalorder %v8_v0, 0  ;;  %vm11_vm1 = vcmp.ne.s32.totalorder %v9_v1, 0 }
   0x3   :  { %v12_v3 = vsel %vm10_vm0, 1, %v21_v2  ;;  %v13_v4 = vsel %vm11_vm1, 1, %v21_v2 }
   0x4   :  { %14 = vst [vmem:[%s45_s1] sm:$0xff] %v12_v3 }
   0x5   :  { %15 = vst [vmem:[%s45_s1 + $0x8] sm:$0xff] %v13_v4 }

</bundles_post_ra>
